<compile_context>
chip_gen: v7x
topology: tpu7x:2x2x1
jax: 0.10.0
libtpu: 0.0.40
codegen_flags: <defaults>
</compile_context>

<pallas_src>
import functools
import math

import jax
import jax.numpy as jnp
from jax.experimental import pallas as pl
from jax.experimental.pallas import tpu as pltpu

LANE = 128


def _round_up(x, m):
    return (x + m - 1) // m * m


@functools.lru_cache(maxsize=None)
def _vmem_limit_bytes():
    """~75% of physical VMEM: 96 MiB on v5e/v6e (128 MiB), 48 MiB on v7x (64 MiB)."""
    try:
        cap = int(pltpu.get_tpu_info().vmem_capacity_bytes)
    except Exception:
        cap = 64 * 1024 * 1024  # conservative (v7x-sized) fallback
    return int(min(cap * 3 // 4, 112 * 1024 * 1024))


def choose_tiles(n):
    """Decoupled tile sizes: (n_pad, tm, tk, tm_feat).

    tm  : aggregate row tile (<=512 so >=2 row tiles keep both v7x TCs busy
          once N is non-toy), tk: reduction tile (<=2048), tm_feat: feature-
          kernel row tile (<=1024).  All divide n_pad.
    """
    n128 = _round_up(n, LANE)
    tm = min(512, n128)
    n_pad = _round_up(n128, tm)
    tk = min(2048, n_pad)
    while n_pad % tk:
        tk -= tm                      # stays a multiple of tm; terminates at tm
    tm_feat = min(1024, n_pad)
    while n_pad % tm_feat:
        tm_feat -= tm
    return n_pad, tm, tk, tm_feat


# ----------------------------------------------------------------------------
# Kernel 1: fused feature transform  Y = X @ [W_l | W_r]
# ----------------------------------------------------------------------------
def _feature_kernel(x_ref, w_ref, y_ref):
    y_ref[...] = jnp.dot(
        x_ref[...], w_ref[...], preferred_element_type=jnp.float32
    ).astype(y_ref.dtype)


def feature_transform(x, w_cat, *, tm_feat):
    n_pad, f_in_pad = x.shape
    two_f = w_cat.shape[1]
    return pl.pallas_call(
        _feature_kernel,
        out_shape=jax.ShapeDtypeStruct((n_pad, two_f), jnp.bfloat16),
        grid_spec=pltpu.PrefetchScalarGridSpec(
            num_scalar_prefetch=0,
            grid=(n_pad // tm_feat,),
            in_specs=[
                pl.BlockSpec((tm_feat, f_in_pad), lambda i: (i, 0)),
                pl.BlockSpec((f_in_pad, two_f), lambda i: (0, 0)),
            ],
            out_specs=pl.BlockSpec((tm_feat, two_f), lambda i: (i, 0)),
        ),
        compiler_params=pltpu.CompilerParams(
            dimension_semantics=("parallel",),
            vmem_limit_bytes=_vmem_limit_bytes(),
        ),
        cost_estimate=pl.CostEstimate(
            flops=2 * n_pad * f_in_pad * two_f,
            transcendentals=0,
            bytes_accessed=2 * (n_pad * f_in_pad + f_in_pad * two_f + n_pad * two_f),
        ),
    )(x, w_cat)


# ----------------------------------------------------------------------------
# Kernel 2: tiled aggregation  out = (A_counts @ Y_l) * inv_deg + Y_r + b (+ReLU)
# ----------------------------------------------------------------------------
def _aggregate_kernel(a_ref, yl_ref, yr_ref, inv_ref, b_ref, o_ref, acc_ref,
                      *, apply_relu):
    k = pl.program_id(1)

    @pl.when(k == 0)
    def _():
        acc_ref[...] = jnp.zeros_like(acc_ref)

    # int8 edge counts -> bf16 for the MXU (cast hidden under the A DMA).
    a_bf16 = a_ref[...].astype(jnp.float32).astype(jnp.bfloat16)
    acc_ref[...] += jnp.dot(a_bf16, yl_ref[...], preferred_element_type=jnp.float32)

    @pl.when(k == pl.num_programs(1) - 1)
    def _():
        out = (acc_ref[...] * inv_ref[...]
               + yr_ref[...].astype(jnp.float32)
               + b_ref[...])
        if apply_relu:
            out = jnp.maximum(out, 0.0)
        o_ref[...] = out.astype(o_ref.dtype)


def aggregate(a_counts, y, inv_deg, b, *, f_pad, tm, tk, apply_relu, out_dtype):
    n_pad = a_counts.shape[0]
    grid = (n_pad // tm, n_pad // tk)
    kernel = functools.partial(_aggregate_kernel, apply_relu=apply_relu)
    return pl.pallas_call(
        kernel,
        out_shape=jax.ShapeDtypeStruct((n_pad, f_pad), out_dtype),
        grid_spec=pltpu.PrefetchScalarGridSpec(
            num_scalar_prefetch=0,
            grid=grid,
            in_specs=[
                pl.BlockSpec((tm, tk), lambda i, k: (i, k)),       # A counts (int8)
                pl.BlockSpec((tk, f_pad), lambda i, k: (k, 0)),    # Y_l (neighbor) rows k
                pl.BlockSpec((tm, f_pad), lambda i, k: (i, 1)),    # Y_r (self) rows i
                pl.BlockSpec((tm, 1), lambda i, k: (i, 0)),        # 1/deg (f32, exact)
                pl.BlockSpec((1, f_pad), lambda i, k: (0, 0)),     # bias
            ],
            out_specs=pl.BlockSpec((tm, f_pad), lambda i, k: (i, 0)),
            scratch_shapes=[pltpu.VMEM((tm, f_pad), jnp.float32)],
        ),
        compiler_params=pltpu.CompilerParams(
            dimension_semantics=("parallel", "arbitrary"),
            vmem_limit_bytes=_vmem_limit_bytes(),
        ),
        cost_estimate=pl.CostEstimate(
            flops=2 * n_pad * n_pad * f_pad,
            transcendentals=0,
            bytes_accessed=(n_pad * n_pad            # int8 A
                            + 4 * n_pad * f_pad      # Y_l + Y_r bf16
                            + 4 * n_pad * f_pad      # out
                            + 4 * n_pad),            # inv_deg
        ),
    )(a_counts, y, y, inv_deg, b)  # y passed twice: specs pick its left/right halves


# ----------------------------------------------------------------------------
# Fused single-tile layer kernel (tiny graphs): one pallas_call per layer.
# ----------------------------------------------------------------------------
def _fused_layer_kernel(a_ref, x_ref, w_ref, inv_ref, b_ref, o_ref,
                        *, f_pad, apply_relu):
    y = jnp.dot(x_ref[...], w_ref[...], preferred_element_type=jnp.float32)
    y_l = y[:, :f_pad].astype(jnp.bfloat16)        # neighbor term input
    y_r = y[:, f_pad:]                              # self term (kept f32)
    a_bf16 = a_ref[...].astype(jnp.float32).astype(jnp.bfloat16)
    agg = jnp.dot(a_bf16, y_l, preferred_element_type=jnp.float32)
    out = agg * inv_ref[...] + y_r + b_ref[...]
    if apply_relu:
        out = jnp.maximum(out, 0.0)
    o_ref[...] = out.astype(o_ref.dtype)


def fused_layer(a_counts, x, w_cat, inv_deg, b, *, apply_relu, out_dtype):
    n_pad, f_in_pad = x.shape
    two_f = w_cat.shape[1]
    f_pad = two_f // 2
    kernel = functools.partial(_fused_layer_kernel, f_pad=f_pad, apply_relu=apply_relu)
    return pl.pallas_call(
        kernel,
        out_shape=jax.ShapeDtypeStruct((n_pad, f_pad), out_dtype),
        grid_spec=pltpu.PrefetchScalarGridSpec(
            num_scalar_prefetch=0,
            grid=(1,),
            in_specs=[
                pl.BlockSpec((n_pad, n_pad), lambda i: (0, 0)),
                pl.BlockSpec((n_pad, f_in_pad), lambda i: (0, 0)),
                pl.BlockSpec((f_in_pad, two_f), lambda i: (0, 0)),
                pl.BlockSpec((n_pad, 1), lambda i: (0, 0)),
                pl.BlockSpec((1, f_pad), lambda i: (0, 0)),
            ],
            out_specs=pl.BlockSpec((n_pad, f_pad), lambda i: (0, 0)),
        ),
        compiler_params=pltpu.CompilerParams(
            dimension_semantics=("arbitrary",),
            vmem_limit_bytes=_vmem_limit_bytes(),
        ),
    )(a_counts, x, w_cat, inv_deg, b)


# ----------------------------------------------------------------------------
# One SAGEConv layer / full model
# ----------------------------------------------------------------------------
def sage_conv_layer(a_counts, inv_deg, x, layer_params, *, tm, tk, tm_feat,
                    apply_relu, out_dtype, use_fused):
    """out = A_mean @ (X @ W_l) + X @ W_r + b   (reassociated & fused)."""
    w_cat = layer_params["w_cat"]          # [Fin_pad, 2*Fout_pad] bf16
    b_pad = layer_params["b_pad"]          # [1, Fout_pad] f32
    f_pad = w_cat.shape[1] // 2
    n_pad = a_counts.shape[0]
    if use_fused and n_pad <= 512:
        # Tiny graph: one launch per layer, no HBM round trip of Y.
        return fused_layer(a_counts, x, w_cat, inv_deg, b_pad,
                           apply_relu=apply_relu, out_dtype=out_dtype)
    y = feature_transform(x, w_cat, tm_feat=tm_feat)
    return aggregate(a_counts, y, inv_deg, b_pad, f_pad=f_pad, tm=tm, tk=tk,
                     apply_relu=apply_relu, out_dtype=out_dtype)


def graphsagex_forward(params, x_bf16, a_counts, inv_deg, *, tm, tk, tm_feat,
                       use_fused=True):
    # x = relu(conv1(x))
    h = sage_conv_layer(a_counts, inv_deg, x_bf16, params["conv1"],
                        tm=tm, tk=tk, tm_feat=tm_feat,
                        apply_relu=True, out_dtype=jnp.bfloat16,
                        use_fused=use_fused)
    # hidden layers: dropout (identity in eval) + relu(convx_i(x))
    for p in params["convx"]:
        h = sage_conv_layer(a_counts, inv_deg, h, p,
                            tm=tm, tk=tk, tm_feat=tm_feat,
                            apply_relu=True, out_dtype=jnp.bfloat16,
                            use_fused=use_fused)
    # dropout (identity in eval) + conv2(x), no relu
    h = sage_conv_layer(a_counts, inv_deg, h, params["conv2"],
                        tm=tm, tk=tk, tm_feat=tm_feat,
                        apply_relu=False, out_dtype=jnp.float32,
                        use_fused=use_fused)
    return h


# ----------------------------------------------------------------------------
# Glue: adjacency counts + exact 1/deg, parameter init, pure-JAX reference
# ----------------------------------------------------------------------------
def build_adjacency_counts(edge_index, num_nodes, n_pad):
    """Returns (int8 padded edge-count matrix, f32 padded 1/in_degree column).

    A_counts[i, j] = #edges j -> i; mean aggregation = (A_counts @ X) * 1/deg.
    Assumes edge multiplicity < 128 so counts fit in int8.
    """
    src, dst = edge_index[0], edge_index[1]
    counts = jnp.zeros((num_nodes, num_nodes), jnp.float32).at[dst, src].add(1.0)
    deg = jnp.sum(counts, axis=1, keepdims=True)
    inv_deg = jnp.where(deg > 0, 1.0 / jnp.maximum(deg, 1.0), 0.0)
    a_pad = (jnp.zeros((n_pad, n_pad), jnp.float32)
             .at[:num_nodes, :num_nodes].set(counts)).astype(jnp.int8)
    inv_pad = jnp.zeros((n_pad, 1), jnp.float32).at[:num_nodes].set(inv_deg)
    return a_pad, inv_pad, counts, deg


def init_sage_layer(key, f_in, f_out, f_in_pad, f_out_pad):
    """PyTorch-Linear-style init; weights stored [F_in, F_out], zero-padded and
    fused as W_cat = [W_l | W_r] (bf16) for the MXU.  Also returns f32 params
    for the pure-JAX reference."""
    kwl, kbl, kwr = jax.random.split(key, 3)
    bound = 1.0 / math.sqrt(f_in)
    w_l = jax.random.uniform(kwl, (f_in, f_out), jnp.float32, -bound, bound)
    b_l = jax.random.uniform(kbl, (f_out,), jnp.float32, -bound, bound)
    w_r = jax.random.uniform(kwr, (f_in, f_out), jnp.float32, -bound, bound)

    w_l_pad = jnp.zeros((f_in_pad, f_out_pad), jnp.float32).at[:f_in, :f_out].set(w_l)
    w_r_pad = jnp.zeros((f_in_pad, f_out_pad), jnp.float32).at[:f_in, :f_out].set(w_r)
    w_cat = jnp.concatenate([w_l_pad, w_r_pad], axis=1).astype(jnp.bfloat16)
    b_pad = jnp.zeros((1, f_out_pad), jnp.float32).at[0, :f_out].set(b_l)
    kernel_params = {"w_cat": w_cat, "b_pad": b_pad}
    ref_params = {"w_l": w_l, "w_r": w_r, "b": b_l}
    return kernel_params, ref_params


def reference_forward(ref_params, x, a_mean):
    """Pure-JAX f32 reference of GraphSAGEX.forward (eval mode)."""
    def layer(h, p, relu):
        out = a_mean @ (h @ p["w_l"]) + h @ p["w_r"] + p["b"]
        return jnp.maximum(out, 0.0) if relu else out
    h = layer(x, ref_params["conv1"], True)
    for p in ref_params["convx"]:
        h = layer(h, p, True)
    return layer(h, ref_params["conv2"], False)


if __name__ == "__main__":
    # Small, deterministic problem consistent with GraphSAGEX(nfeat, nhid, nclass)
    N, NFEAT, NHID, NCLASS, NLAYER = 256, 16, 32, 8, 3
    NUM_EDGES = 1024

    N_PAD, TM, TK, TM_FEAT = choose_tiles(N)
    F_IN_PAD = _round_up(NFEAT, LANE)
    F_HID_PAD = _round_up(NHID, LANE)
    F_CLS_PAD = _round_up(NCLASS, LANE)

    key = jax.random.PRNGKey(0)
    kx, ke_src, ke_dst, kp = jax.random.split(key, 4)

    x = jax.random.normal(kx, (N, NFEAT), jnp.float32)
    src = jax.random.randint(ke_src, (NUM_EDGES,), 0, N)
    dst = jax.random.randint(ke_dst, (NUM_EDGES,), 0, N)
    edge_index = jnp.stack([src, dst], axis=0)            # [2, E]

    a_counts, inv_deg, counts_f32, deg = build_adjacency_counts(edge_index, N, N_PAD)

    # Zero-pad node features and cast to bf16 for the MXU.
    x_pad = jnp.zeros((N_PAD, F_IN_PAD), jnp.float32).at[:N, :NFEAT].set(x)
    x_bf16 = x_pad.astype(jnp.bfloat16)

    kp1, kp2, *kpx = jax.random.split(kp, NLAYER)
    p1, r1 = init_sage_layer(kp1, NFEAT, NHID, F_IN_PAD, F_HID_PAD)
    p2, r2 = init_sage_layer(kp2, NHID, NCLASS, F_HID_PAD, F_CLS_PAD)
    px, rx = [], []
    for kk in kpx:
        pk, rk = init_sage_layer(kk, NHID, NHID, F_HID_PAD, F_HID_PAD)
        px.append(pk)
        rx.append(rk)
    params = {"conv1": p1, "convx": px, "conv2": p2}
    ref_params = {"conv1": r1, "convx": rx, "conv2": r2}

    # Pure-JAX f32 reference.
    a_mean_ref = counts_f32 / jnp.maximum(deg, 1.0)
    ref = reference_forward(ref_params, x, a_mean_ref)

    # Path 1: fused single-tile layer kernels (tiny-graph fast path).
    out_fused_pad = graphsagex_forward(params, x_bf16, a_counts, inv_deg,
                                       tm=TM, tk=TK, tm_feat=TM_FEAT,
                                       use_fused=True)
    out_fused_pad = jax.block_until_ready(out_fused_pad)
    out_fused = out_fused_pad[:N, :NCLASS]

    # Path 2: general tiled feature + aggregate kernels (forced small tiles so
    # the multi-step reduction / pl.when accumulator path is exercised).
    out_tiled_pad = graphsagex_forward(params, x_bf16, a_counts, inv_deg,
                                       tm=128, tk=128, tm_feat=128,
                                       use_fused=False)
    out_tiled_pad = jax.block_until_ready(out_tiled_pad)
    out_tiled = out_tiled_pad[:N, :NCLASS]

    scale = float(jnp.max(jnp.abs(ref))) + 1.0
    assert out_fused.shape == (N, NCLASS)
    assert out_tiled.shape == (N, NCLASS)
    assert bool(jnp.all(jnp.isfinite(out_fused)))
    assert bool(jnp.all(jnp.isfinite(out_tiled)))
    assert float(jnp.max(jnp.abs(out_fused - ref))) < 0.1 * scale, "fused path mismatch"
    assert float(jnp.max(jnp.abs(out_tiled - ref))) < 0.1 * scale, "tiled path mismatch"

    print("KERNEL_OK")
</pallas_src>

<mosaic_0001>
module attributes {stable_mosaic.version = 11 : i64} {
  func.func @_fused_layer_kernel(%arg0: i32, %arg1: memref<256x256xi8, #tpu.memory_space<vmem>>, %arg2: memref<256x128xbf16, #tpu.memory_space<vmem>>, %arg3: memref<128x256xbf16, #tpu.memory_space<vmem>>, %arg4: memref<256x1xf32, #tpu.memory_space<vmem>>, %arg5: memref<1x128xf32, #tpu.memory_space<vmem>>, %arg6: memref<256x128xbf16, #tpu.memory_space<vmem>>) attributes {dimension_semantics = [#tpu.dimension_semantics<arbitrary>], iteration_bounds = array<i64: 1>, scalar_prefetch = 0 : i64, scratch_operands = 0 : i64, tpu.core_type = #tpu.core_type<tc>, window_params = [{pipeline_mode = #tpu.pipeline_mode<synchronous>, transform_indices = @transform_0, window_bounds = array<i64: 256, 256>}, {pipeline_mode = #tpu.pipeline_mode<synchronous>, transform_indices = @transform_1, window_bounds = array<i64: 256, 128>}, {pipeline_mode = #tpu.pipeline_mode<synchronous>, transform_indices = @transform_2, window_bounds = array<i64: 128, 256>}, {pipeline_mode = #tpu.pipeline_mode<synchronous>, transform_indices = @transform_3, window_bounds = array<i64: 256, 1>}, {pipeline_mode = #tpu.pipeline_mode<synchronous>, transform_indices = @transform_4, window_bounds = array<i64: 1, 128>}, {pipeline_mode = #tpu.pipeline_mode<synchronous>, transform_indices = @transform_5, window_bounds = array<i64: 256, 128>}]} {
    %c0 = arith.constant 0 : index
    %c0_0 = arith.constant 0 : index
    %0 = vector.load %arg2[%c0, %c0_0] : memref<256x128xbf16, #tpu.memory_space<vmem>>, vector<256x128xbf16>
    %c0_1 = arith.constant 0 : index
    %c0_2 = arith.constant 0 : index
    %1 = vector.load %arg3[%c0_1, %c0_2] : memref<128x256xbf16, #tpu.memory_space<vmem>>, vector<128x256xbf16>
    %cst = arith.constant dense<0.000000e+00> : vector<256x256xf32>
    %2 = tpu.matmul %0, %1, %cst {dimension_numbers = #tpu.dot_dimension_numbers<[1], [0], [0], [1], [0, 0, 1, 1], [], []>} : vector<256x128xbf16>, vector<128x256xbf16>, vector<256x256xf32> -> vector<256x256xf32>
    %3 = vector.extract_strided_slice %2 {offsets = [0, 0], sizes = [256, 128], strides = [1, 1]} : vector<256x256xf32> to vector<256x128xf32>
    %4 = arith.truncf %3 : vector<256x128xf32> to vector<256x128xbf16>
    %5 = vector.extract_strided_slice %2 {offsets = [0, 128], sizes = [256, 128], strides = [1, 1]} : vector<256x256xf32> to vector<256x128xf32>
    %c0_3 = arith.constant 0 : index
    %c0_4 = arith.constant 0 : index
    %6 = vector.load %arg1[%c0_3, %c0_4] : memref<256x256xi8, #tpu.memory_space<vmem>>, vector<256x256xi8>
    %7 = arith.sitofp %6 : vector<256x256xi8> to vector<256x256xf32>
    %8 = arith.truncf %7 : vector<256x256xf32> to vector<256x256xbf16>
    %cst_5 = arith.constant dense<0.000000e+00> : vector<256x128xf32>
    %9 = tpu.matmul %8, %4, %cst_5 {dimension_numbers = #tpu.dot_dimension_numbers<[1], [0], [0], [1], [0, 0, 1, 1], [], []>} : vector<256x256xbf16>, vector<256x128xbf16>, vector<256x128xf32> -> vector<256x128xf32>
    %c0_6 = arith.constant 0 : index
    %c0_7 = arith.constant 0 : index
    %10 = vector.load %arg4[%c0_6, %c0_7] : memref<256x1xf32, #tpu.memory_space<vmem>>, vector<256x1xf32>
    %11 = vector.broadcast %10 : vector<256x1xf32> to vector<256x128xf32>
    %12 = arith.mulf %9, %11 : vector<256x128xf32>
    %13 = arith.addf %12, %5 : vector<256x128xf32>
    %c0_8 = arith.constant 0 : index
    %c0_9 = arith.constant 0 : index
    %14 = vector.load %arg5[%c0_8, %c0_9] : memref<1x128xf32, #tpu.memory_space<vmem>>, vector<1x128xf32>
    %15 = vector.broadcast %14 : vector<1x128xf32> to vector<256x128xf32>
    %16 = arith.addf %13, %15 : vector<256x128xf32>
    %cst_10 = arith.constant 0.000000e+00 : f32
    %17 = vector.broadcast %cst_10 : f32 to vector<256x128xf32>
    %18 = arith.maximumf %16, %17 : vector<256x128xf32>
    %19 = arith.truncf %18 : vector<256x128xf32> to vector<256x128xbf16>
    %c0_11 = arith.constant 0 : index
    %c0_12 = arith.constant 0 : index
    %20 = vector.load %arg6[%c0_11, %c0_12] : memref<256x128xbf16, #tpu.memory_space<vmem>>, vector<256x128xbf16>
    tpu.vector_store %arg6[%c0_11, %c0_12], %19 {strides = array<i32>} : memref<256x128xbf16, #tpu.memory_space<vmem>>, vector<256x128xbf16>,
    return
  }
  func.func @transform_0(%arg0: i32) -> (i32, i32) {
    %c0_i32 = arith.constant 0 : i32
    %c0_i32_0 = arith.constant 0 : i32
    %c0_i32_1 = arith.constant 0 : i32
    return %c0_i32, %c0_i32_0 : i32, i32
  }
  func.func @transform_1(%arg0: i32) -> (i32, i32) {
    %c0_i32 = arith.constant 0 : i32
    %c0_i32_0 = arith.constant 0 : i32
    %c0_i32_1 = arith.constant 0 : i32
    return %c0_i32, %c0_i32_0 : i32, i32
  }
  func.func @transform_2(%arg0: i32) -> (i32, i32) {
    %c0_i32 = arith.constant 0 : i32
    %c0_i32_0 = arith.constant 0 : i32
    %c0_i32_1 = arith.constant 0 : i32
    return %c0_i32, %c0_i32_0 : i32, i32
  }
  func.func @transform_3(%arg0: i32) -> (i32, i32) {
    %c0_i32 = arith.constant 0 : i32
    %c0_i32_0 = arith.constant 0 : i32
    %c0_i32_1 = arith.constant 0 : i32
    return %c0_i32, %c0_i32_0 : i32, i32
  }
  func.func @transform_4(%arg0: i32) -> (i32, i32) {
    %c0_i32 = arith.constant 0 : i32
    %c0_i32_0 = arith.constant 0 : i32
    %c0_i32_1 = arith.constant 0 : i32
    return %c0_i32, %c0_i32_0 : i32, i32
  }
  func.func @transform_5(%arg0: i32) -> (i32, i32) {
    %c0_i32 = arith.constant 0 : i32
    %c0_i32_0 = arith.constant 0 : i32
    %c0_i32_1 = arith.constant 0 : i32
    return %c0_i32, %c0_i32_0 : i32, i32
  }
}

</mosaic_0001>

<bundles_post_ra>
// kernel: tpu_custom_call.1
= control target key start
LH: loop header
LB: loop body
LE: loop exit
PB: predicated region body
PF: predicated region fallthrough
CT: control target
= control target key end

     0   :  { %10 = vsyncpa [#allocation3], 0  ;;  %s2027_s0 = inlined_call_operand.vmem [shape: s8[256,256], index: 0, kind: input, shape index: {}]   ;;  %s2028_s1 = inlined_call_operand.vmem [shape: bf16[256,128], index: 1, kind: input, shape index: {}]   ;;  %s2029_s2 = inlined_call_operand.hbm [shape: bf16[128,256], index: 2, kind: input, shape index: {}]   ;;  %s2030_s3 = inlined_call_operand.vmem [shape: f32[256,1], index: 3, kind: input, shape index: {}]   ;;  %s2031_s4 = inlined_call_operand.vmem [shape: f32[1,128], index: 4, kind: input, shape index: {}]   ;;  %s2032_s5 = inlined_call_operand.hbm [shape: bf16[256,128], index: 5, kind: output, shape index: {}]  }
   0x1   :  { %11 = vsyncpa [#allocation4], 0  ;;  %s1583_s18 = smov [#allocation2]   ;;  %s1535_s22 = scalar_lea.hbm %s2029_s2, 2048 }
   0x2   :  { %s21_s19 = sshll.u32 %s1583_s18, 4  ;;  %p1536_p0 = scmp.ne.s32.totalorder %s2029_s2, %s1535_s22  ;;  %s22_s19 = int_to_ptr.vmem [resolvable:$true] %s21_s19 }
   0x3   :  { %p1539_p1 = scmp.lt.u32.totalorder %s1535_s22, %s2029_s2 }
   0x5   :  { %p1541_p2 = pnand %p1539_p1, %p1536_p0 }
   0x7   :  { %1544 = shalt.err (!%p1541_p2)
}
   0x8   :  { %s1545_s27 = scalar_lea.vmem %s22_s19, 2048  ;;  %p1550_p4 = scmp.lt.s32.totalorder %s22_s19, %s22_s19 }
   0x9   :  { %p1546_p3 = scmp.ne.s32.totalorder %s22_s19, %s1545_s27  ;;  %p1551_p5 = scmp.lt.s32.totalorder %s1545_s27, %s1545_s27 }
   0xb   :  { %p1552_p6 = por %p1551_p5, %p1550_p4 }
   0xd   :  { %p1553_p7 = pnand %p1552_p6, %p1546_p3 }
   0xf   :  { %1556 = shalt.err (!%p1553_p7)
}
  0x10   :  { %s1584_s28 = smov 128   ;;  %s1585_s29 = smov 8  }
  0x11   :  { %27 = dma.hbm_to_vmem [thread:$0]  %s2029_s2, 2048, %s22_s19, [#allocation3], %s1584_s28, %s1584_s28, %s1585_s29  }
  0x12   :  { %1579 = dma.done.wait [#allocation3], 2048  }
  0x13   :  { %1580 = vsyncadd [#allocation3], 4294965248  ;;  %v1586_v0 = vmov 0   ;;  %v1495_v1 = vld [vmem:[#allocation2 + $0x4] ss:$8 sps:$4 sm:$0xff]   ;;  %v1521_v19 = vld [vmem:[%s2028_s1 + $0x10] sm:$0xff]  }
  0x14   :  { %292 = vmatprep.mubr.bf16.mxu0 %v1586_v0  ;;  %1493 = vset.pattern.permute.xlu0 %v1586_v0  ;;  %v1497_v2 = vld [vmem:[#allocation2] ss:$8 sps:$4 sm:$0xff]   ;;  %v1498_v3 = vld [vmem:[#allocation2 + $0x14] ss:$8 sps:$4 sm:$0xff]   ;;  %v1500_v4 = vld [vmem:[#allocation2 + $0x10] ss:$8 sps:$4 sm:$0xff]  }
  0x15   :  { %1494 = vset.pattern.permute.xlu1 %v1586_v0  ;;  %260 = vmatprep.subr.bf16.mxu0 %v1495_v1  ;;  %v1501_v5 = vld [vmem:[#allocation2 + $0x24] ss:$8 sps:$4 sm:$0xff]   ;;  %v1503_v6 = vld [vmem:[#allocation2 + $0x20] ss:$8 sps:$4 sm:$0xff]   ;;  %v1504_v7 = vld [vmem:[#allocation2 + $0x34] ss:$8 sps:$4 sm:$0xff]  }
  0x16   :  { %261 = vmatpush1.bf16.msra.mxu0 %v1497_v2  ;;  %v1506_v8 = vld [vmem:[#allocation2 + $0x30] ss:$8 sps:$4 sm:$0xff]   ;;  %v1507_v9 = vld [vmem:[#allocation2 + $0x44] ss:$8 sps:$4 sm:$0xff]   ;;  %v1509_v10 = vld [vmem:[#allocation2 + $0x40] ss:$8 sps:$4 sm:$0xff]  }
  0x17   :  { %262 = vmatprep.subr.bf16.mxu0 %v1498_v3  ;;  %v1510_v11 = vld [vmem:[#allocation2 + $0x54] ss:$8 sps:$4 sm:$0xff]   ;;  %v1512_v12 = vld [vmem:[#allocation2 + $0x50] ss:$8 sps:$4 sm:$0xff]   ;;  %v1513_v13 = vld [vmem:[#allocation2 + $0x64] ss:$8 sps:$4 sm:$0xff]  }
  0x18   :  { %v1515_v14 = vld [vmem:[#allocation2 + $0x60] ss:$8 sps:$4 sm:$0xff]   ;;  %v1516_v15 = vld [vmem:[#allocation2 + $0x74] ss:$8 sps:$4 sm:$0xff]   ;;  %v1518_v16 = vld [vmem:[#allocation2 + $0x70] ss:$8 sps:$4 sm:$0xff]  }
  0x19   :  { %v1519_v17 = vld [vmem:[%s2028_s1] sm:$0xff]   ;;  %v1520_v18 = vld [vmem:[%s2028_s1 + $0x8] sm:$0xff]   ;;  %v1522_v20 = vld [vmem:[%s2028_s1 + $0x18] sm:$0xff]  }
  0x1a   :  { %263 = vmatpush1.bf16.msra.mxu0 %v1500_v4  ;;  %v1523_v21 = vld [vmem:[%s2028_s1 + $0x20] sm:$0xff]   ;;  %v1524_v22 = vld [vmem:[%s2028_s1 + $0x28] sm:$0xff]   ;;  %v1525_v23 = vld [vmem:[%s2028_s1 + $0x30] sm:$0xff]  }
  0x1b   :  { %264 = vmatprep.subr.bf16.mxu0 %v1501_v5  ;;  %v1526_v24 = vld [vmem:[%s2028_s1 + $0x38] sm:$0xff]   ;;  %v1527_v25 = vld [vmem:[%s2028_s1 + $0x40] sm:$0xff]   ;;  %v1528_v26 = vld [vmem:[%s2028_s1 + $0x48] sm:$0xff]  }
  0x1c   :  { %v1529_v27 = vld [vmem:[%s2028_s1 + $0x50] sm:$0xff]   ;;  %v1530_v28 = vld [vmem:[%s2028_s1 + $0x58] sm:$0xff]   ;;  %v1531_v29 = vld [vmem:[%s2028_s1 + $0x60] sm:$0xff]  }
  0x1d   :  { %v1532_v30 = vld [vmem:[%s2028_s1 + $0x68] sm:$0xff]   ;;  %v1533_v31 = vld [vmem:[%s2028_s1 + $0x70] sm:$0xff]   ;;  %v1534_v32 = vld [vmem:[%s2028_s1 + $0x78] sm:$0xff]  }
  0x1e   :  { %265 = vmatpush1.bf16.msra.mxu0 %v1503_v6  ;;  %v1701_v33 = vld [vmem:[%s2027_s0 + $0x8] sm:$0xff] }
  0x1f   :  { %266 = vmatprep.subr.bf16.mxu0 %v1504_v7  ;;  %v486_v34 = vunpack.c.l.s8.bf16 %v1701_v33 }
  0x21   :  { %549 = vmatprep.mubr.bf16.mxu1 %v486_v34 }
  0x22   :  { %267 = vmatpush1.bf16.msra.mxu0 %v1506_v8 }
  0x23   :  { %268 = vmatprep.subr.bf16.mxu0 %v1507_v9 }
  0x26   :  { %269 = vmatpush1.bf16.msra.mxu0 %v1509_v10 }
  0x27   :  { %270 = vmatprep.subr.bf16.mxu0 %v1510_v11 }
  0x2a   :  { %271 = vmatpush1.bf16.msra.mxu0 %v1512_v12 }
  0x2b   :  { %272 = vmatprep.subr.bf16.mxu0 %v1513_v13 }
  0x2e   :  { %273 = vmatpush1.bf16.msra.mxu0 %v1515_v14 }
  0x2f   :  { %274 = vmatprep.subr.bf16.mxu0 %v1516_v15 }
  0x32   :  { %275 = vmatpush1.bf16.msra.mxu0 %v1518_v16 }
  0x35   :  { %293 = vmatmul.mubr.bf16.vlgmr.msra.gmra.mrb[0].mxu0 %v1519_v17 }
  0x36   :  { %302 = vmatprep.mubr.bf16.mxu0 %v1586_v0 }
  0x3d   :  { %303 = vmatmul.mubr.bf16.gmra.mrb[4].mxu0 %v1520_v18 }
  0x3e   :  { %312 = vmatprep.mubr.bf16.mxu0 %v1586_v0 }
  0x45   :  { %313 = vmatmul.mubr.bf16.gmra.mrb[8].mxu0 %v1521_v19 }
  0x46   :  { %322 = vmatprep.mubr.bf16.mxu0 %v1586_v0 }
  0x4d   :  { %323 = vmatmul.mubr.bf16.gmra.mrb[12].mxu0 %v1522_v20 }
  0x4e   :  { %332 = vmatprep.mubr.bf16.mxu0 %v1586_v0 }
  0x55   :  { %333 = vmatmul.mubr.bf16.gmra.mrb[16].mxu0 %v1523_v21 }
  0x56   :  { %342 = vmatprep.mubr.bf16.mxu0 %v1586_v0 }
  0x5d   :  { %343 = vmatmul.mubr.bf16.gmra.mrb[20].mxu0 %v1524_v22 }
  0x5e   :  { %352 = vmatprep.mubr.bf16.mxu0 %v1586_v0 }
  0x65   :  { %353 = vmatmul.mubr.bf16.gmra.mrb[24].mxu0 %v1525_v23  ;;  %v678_v23 = vld [vmem:[%s2030_s3] sm:$0xff] }
  0x66   :  { %362 = vmatprep.mubr.bf16.mxu0 %v1586_v0  ;;  %712 = vperm.xlu0 %1493, %v678_v23   ;;  %v690_v23 = vld [vmem:[%s2030_s3 + $0x60] sm:$0xff] }
  0x6d   :  { %363 = vmatmul.mubr.bf16.gmra.mrb[28].mxu0 %v1526_v24 }
  0x6e   :  { %372 = vmatprep.mubr.bf16.mxu0 %v1586_v0 }
  0x75   :  { %373 = vmatmul.mubr.bf16.gmra.mrb[32].mxu0 %v1527_v25 }
  0x76   :  { %382 = vmatprep.mubr.bf16.mxu0 %v1586_v0 }
  0x7d   :  { %383 = vmatmul.mubr.bf16.gmra.mrb[36].mxu0 %v1528_v26 }
  0x7e   :  { %392 = vmatprep.mubr.bf16.mxu0 %v1586_v0 }
  0x85   :  { %393 = vmatmul.mubr.bf16.gmra.mrb[40].mxu0 %v1529_v27 }
  0x86   :  { %402 = vmatprep.mubr.bf16.mxu0 %v1586_v0 }
  0x8d   :  { %403 = vmatmul.mubr.bf16.gmra.mrb[44].mxu0 %v1530_v28 }
  0x8e   :  { %412 = vmatprep.mubr.bf16.mxu0 %v1586_v0 }
  0x95   :  { %413 = vmatmul.mubr.bf16.gmra.mrb[48].mxu0 %v1531_v29  ;;  %v680_v29 = vld [vmem:[%s2030_s3 + $0x10] sm:$0xff] }
  0x96   :  { %422 = vmatprep.mubr.bf16.mxu0 %v1586_v0  ;;  %722 = vperm.xlu1 %1494, %v680_v29  }
  0x9d   :  { %423 = vmatmul.mubr.bf16.gmra.mrb[52].mxu0 %v1532_v30  ;;  %v679_v30 = vld [vmem:[%s2030_s3 + $0x8] sm:$0xff] }
  0x9e   :  { %432 = vmatprep.mubr.bf16.mxu0 %v1586_v0  ;;  %717 = vperm.xlu0 %1493, %v679_v30   ;;  %v695_v30 = vld [vmem:[%s2030_s3 + $0x88] sm:$0xff] }
  0xa5   :  { %433 = vmatmul.mubr.bf16.gmra.mrb[56].mxu0 %v1533_v31 }
  0xa6   :  { %442 = vmatprep.mubr.bf16.mxu0 %v1586_v0 }
  0xad   :  { %443 = vmatmul.mubr.bf16.gmra.mrb[60].mxu0 %v1534_v32 }
 0x108   :  { %v294_v35 = vpop.f32.mrb[0].mxu0 }
 0x109   :  { %v1704_v36 = vpop.f32.mrb[1].mxu0 }
 0x10a   :  { %v298_v37 = vpop.f32.mrb[2].mxu0 }
 0x10b   :  { %v453_v38 = vpack.c.bf16 %v298_v37, %v294_v35  ;;  %v1706_v39 = vpop.f32.mrb[3].mxu0  ;;  %v681_v35 = vld [vmem:[%s2030_s3 + $0x18] sm:$0xff] }
 0x10c   :  { %727 = vperm.xlu1 %1494, %v681_v35   ;;  %v469_v35 = vld [vmem:[%s2027_s0] sm:$0xff] }
 0x110   :  { %v304_v40 = vpop.f32.mrb[4].mxu0 }
 0x111   :  { %v1708_v41 = vpop.f32.mrb[5].mxu0 }
 0x112   :  { %v308_v42 = vpop.f32.mrb[6].mxu0 }
 0x113   :  { %v454_v43 = vpack.c.bf16 %v308_v42, %v304_v40  ;;  %v1710_v44 = vpop.f32.mrb[7].mxu0  ;;  %v683_v40 = vld [vmem:[%s2030_s3 + $0x28] sm:$0xff]  ;;  %v682_v42 = vld [vmem:[%s2030_s3 + $0x20] sm:$0xff] }
 0x114   :  { %737 = vperm.xlu1 %1494, %v683_v40   ;;  %732 = vperm.xlu0 %1493, %v682_v42   ;;  %v485_v40 = vunpack.c.l.s8.bf16 %v469_v35  ;;  %v488_v42 = vunpack.c.h.s8.bf16 %v1701_v33  ;;  %v701_v33 = vld [vmem:[%s2030_s3 + $0xb8] sm:$0xff] }
 0x118   :  { %v314_v45 = vpop.f32.mrb[8].mxu0 }
 0x119   :  { %v1712_v46 = vpop.f32.mrb[9].mxu0 }
 0x11a   :  { %v318_v47 = vpop.f32.mrb[10].mxu0 }
 0x11b   :  { %v455_v48 = vpack.c.bf16 %v318_v47, %v314_v45  ;;  %v1714_v49 = vpop.f32.mrb[11].mxu0 }
 0x120   :  { %v324_v50 = vpop.f32.mrb[12].mxu0 }
 0x121   :  { %v1716_v51 = vpop.f32.mrb[13].mxu0 }
 0x122   :  { %v328_v52 = vpop.f32.mrb[14].mxu0 }
 0x123   :  { %v456_v53 = vpack.c.bf16 %v328_v52, %v324_v50  ;;  %v1718_v54 = vpop.f32.mrb[15].mxu0  ;;  %v684_v50 = vld [vmem:[%s2030_s3 + $0x30] sm:$0xff] }
 0x124   :  { %742 = vperm.xlu0 %1493, %v684_v50   ;;  %v703_v50 = vld [vmem:[%s2030_s3 + $0xc8] sm:$0xff] }
 0x128   :  { %v1720_v55 = vpop.f32.mrb[16].mxu0 }
 0x129   :  { %v1722_v56 = vpop.f32.mrb[17].mxu0 }
 0x12a   :  { %v1724_v57 = vpop.f32.mrb[18].mxu0 }
 0x12b   :  { %v457_v58 = vpack.c.bf16 %v1724_v57, %v1720_v55  ;;  %v1728_v59 = vpop.f32.mrb[19].mxu0  ;;  %v689_v55 = vld [vmem:[%s2030_s3 + $0x58] sm:$0xff]  ;;  %v688_v57 = vld [vmem:[%s2030_s3 + $0x50] sm:$0xff] }
 0x130   :  { %v1730_v60 = vpop.f32.mrb[20].mxu0 }
 0x131   :  { %v1732_v61 = vpop.f32.mrb[21].mxu0 }
 0x132   :  { %v1734_v62 = vpop.f32.mrb[22].mxu0 }
 0x133   :  { %v458_v63 = vpack.c.bf16 %v1734_v62, %v1730_v60  ;;  %v1738_v0 = vpop.f32.mrb[23].mxu0  ;;  %v693_v60 = vld [vmem:[%s2030_s3 + $0x78] sm:$0xff]  ;;  %v692_v62 = vld [vmem:[%s2030_s3 + $0x70] sm:$0xff] }
 0x138   :  { %v1740_v1 = vpop.f32.mrb[24].mxu0 }
 0x139   :  { %v1742_v2 = vpop.f32.mrb[25].mxu0 }
 0x13a   :  { %v1744_v3 = vpop.f32.mrb[26].mxu0 }
 0x13b   :  { %v459_v4 = vpack.c.bf16 %v1744_v3, %v1740_v1  ;;  %v1748_v5 = vpop.f32.mrb[27].mxu0 }
 0x140   :  { %v1750_v6 = vpop.f32.mrb[28].mxu0 }
 0x141   :  { %v1752_v7 = vpop.f32.mrb[29].mxu0 }
 0x142   :  { %v1754_v8 = vpop.f32.mrb[30].mxu0 }
 0x143   :  { %v460_v9 = vpack.c.bf16 %v1754_v8, %v1750_v6  ;;  %v1758_v10 = vpop.f32.mrb[31].mxu0  ;;  %v472_v6 = vld [vmem:[%s2027_s0 + $0x18] sm:$0xff]  ;;  %v700_v8 = vld [vmem:[%s2030_s3 + $0xb0] sm:$0xff] }
 0x148   :  { %v374_v11 = vpop.f32.mrb[32].mxu0 }
 0x149   :  { %v1760_v12 = vpop.f32.mrb[33].mxu0 }
 0x14a   :  { %v378_v13 = vpop.f32.mrb[34].mxu0 }
 0x14b   :  { %v1762_v14 = vpop.f32.mrb[35].mxu0  ;;  %v461_v15 = vpack.c.bf16 %v378_v13, %v374_v11  ;;  %v687_v11 = vld [vmem:[%s2030_s3 + $0x48] sm:$0xff]  ;;  %v686_v13 = vld [vmem:[%s2030_s3 + $0x40] sm:$0xff] }
 0x14c   :  { %752 = vperm.xlu0 %1493, %v686_v13   ;;  %v705_v13 = vld [vmem:[%s2030_s3 + $0xd8] sm:$0xff] }
 0x14d   :  { %1374 = vmatprep.subr.bf16.mxu1 %v461_v15 }
 0x14e   :  { %1375 = vmatpush3.bf16.msra.mxu1 %v453_v38 }
 0x150   :  { %v384_v16 = vpop.f32.mrb[36].mxu0  ;;  %762 = vperm.xlu0 %1493, %v688_v57   ;;  %v707_v57 = vld [vmem:[%s2030_s3 + $0xe8] sm:$0xff] }
 0x151   :  { %v1764_v17 = vpop.f32.mrb[37].mxu0 }
 0x152   :  { %v388_v18 = vpop.f32.mrb[38].mxu0 }
 0x153   :  { %v462_v19 = vpack.c.bf16 %v388_v18, %v384_v16  ;;  %v1766_v20 = vpop.f32.mrb[39].mxu0 }
 0x154   :  { %772 = vperm.xlu0 %1493, %v690_v23   ;;  %v709_v23 = vld [vmem:[%s2030_s3 + $0xf8] sm:$0xff] }
 0x155   :  { %1376 = vmatprep.subr.bf16.mxu1 %v462_v19 }
 0x156   :  { %1377 = vmatpush3.bf16.msra.mxu1 %v454_v43 }
 0x158   :  { %v394_v21 = vpop.f32.mrb[40].mxu0  ;;  %782 = vperm.xlu0 %1493, %v692_v62   ;;  %v473_v62 = vld [vmem:[%s2027_s0 + $0x20] sm:$0xff] }
 0x159   :  { %v1768_v22 = vpop.f32.mrb[41].mxu0 }
 0x15a   :  { %v398_v24 = vpop.f32.mrb[42].mxu0 }
 0x15b   :  { %v463_v25 = vpack.c.bf16 %v398_v24, %v394_v21  ;;  %v1773_v26 = vpop.f32.mrb[43].mxu0  ;;  %v691_v21 = vld [vmem:[%s2030_s3 + $0x68] sm:$0xff] }
 0x15d   :  { %1378 = vmatprep.subr.bf16.mxu1 %v463_v25 }
 0x15e   :  { %1379 = vmatpush3.bf16.msra.mxu1 %v455_v48  ;;  %v685_v48 = vld [vmem:[%s2030_s3 + $0x38] sm:$0xff] }
 0x15f   :  { %747 = vperm.xlu1 %1494, %v685_v48   ;;  %v490_v48 = vunpack.c.l.s8.bf16 %v472_v6 }
 0x160   :  { %v404_v27 = vpop.f32.mrb[44].mxu0 }
 0x161   :  { %v1775_v28 = vpop.f32.mrb[45].mxu0 }
 0x162   :  { %v408_v31 = vpop.f32.mrb[46].mxu0 }
 0x163   :  { %v464_v32 = vpack.c.bf16 %v408_v31, %v404_v27  ;;  %v1783_v34 = vpop.f32.mrb[47].mxu0  ;;  %757 = vperm.xlu1 %1494, %v687_v11   ;;  %v694_v31 = vld [vmem:[%s2030_s3 + $0x80] sm:$0xff]  ;;  %v471_v11 = vld [vmem:[%s2027_s0 + $0x10] sm:$0xff] }
 0x164   :  { %792 = vperm.xlu0 %1493, %v694_v31   ;;  %v476_v31 = vld [vmem:[%s2027_s0 + $0x38] sm:$0xff] }
 0x165   :  { %1380 = vmatprep.subr.bf16.mxu1 %v464_v32 }
 0x166   :  { %1381 = vmatpush3.bf16.msra.mxu1 %v456_v53 }
 0x167   :  { %767 = vperm.xlu1 %1494, %v689_v55   ;;  %v492_v55 = vunpack.c.h.s8.bf16 %v472_v6 }
 0x168   :  { %v414_v37 = vpop.f32.mrb[48].mxu0 }
 0x169   :  { %v1788_v38 = vpop.f32.mrb[49].mxu0 }
 0x16a   :  { %v418_v43 = vpop.f32.mrb[50].mxu0 }
 0x16b   :  { %v465_v45 = vpack.c.bf16 %v418_v43, %v414_v37  ;;  %v1796_v47 = vpop.f32.mrb[51].mxu0  ;;  %777 = vperm.xlu1 %1494, %v691_v21   ;;  %v696_v37 = vld [vmem:[%s2030_s3 + $0x90] sm:$0xff]  ;;  %v699_v43 = vld [vmem:[%s2030_s3 + $0xa8] sm:$0xff] }
 0x16c   :  { %802 = vperm.xlu0 %1493, %v696_v37   ;;  %v474_v21 = vld [vmem:[%s2027_s0 + $0x28] sm:$0xff]  ;;  %v500_v37 = vunpack.c.h.s8.bf16 %v476_v31 }
 0x16d   :  { %1382 = vmatprep.subr.bf16.mxu1 %v465_v45  ;;  %v698_v45 = vld [vmem:[%s2030_s3 + $0xa0] sm:$0xff] }
 0x16e   :  { %1383 = vmatpush3.bf16.msra.mxu1 %v457_v58 }
 0x16f   :  { %787 = vperm.xlu1 %1494, %v693_v60   ;;  %v494_v60 = vunpack.c.l.s8.bf16 %v474_v21 }
 0x170   :  { %v424_v52 = vpop.f32.mrb[52].mxu0  ;;  %812 = vperm.xlu0 %1493, %v698_v45   ;;  %v477_v45 = vld [vmem:[%s2027_s0 + $0x40] sm:$0xff] }
 0x171   :  { %v1807_v53 = vpop.f32.mrb[53].mxu0  ;;  %v501_v6 = vunpack.c.l.s8.bf16 %v477_v45 }
 0x172   :  { %v428_v15 = vpop.f32.mrb[54].mxu0 }
 0x173   :  { %v466_v16 = vpack.c.bf16 %v428_v15, %v424_v52  ;;  %v1815_v18 = vpop.f32.mrb[55].mxu0  ;;  %797 = vperm.xlu1 %1494, %v695_v30   ;;  %v702_v52 = vld [vmem:[%s2030_s3 + $0xc0] sm:$0xff]  ;;  %v704_v15 = vld [vmem:[%s2030_s3 + $0xd0] sm:$0xff]  ;;  %v496_v30 = vunpack.c.h.s8.bf16 %v474_v21  ;;  %v484_v21 = vld [vmem:[%s2027_s0 + $0x78] sm:$0xff] }
 0x174   :  { %822 = vperm.xlu0 %1493, %v700_v8   ;;  %v480_v8 = vld [vmem:[%s2027_s0 + $0x58] sm:$0xff] }
 0x175   :  { %1384 = vmatprep.subr.bf16.mxu1 %v466_v16  ;;  %v489_v16 = vunpack.c.l.s8.bf16 %v471_v11 }
 0x176   :  { %1385 = vmatpush3.bf16.msra.mxu1 %v458_v63 }
 0x178   :  { %v434_v58 = vpop.f32.mrb[56].mxu0  ;;  %832 = vperm.xlu0 %1493, %v702_v52  }
 0x179   :  { %v1826_v19 = vpop.f32.mrb[57].mxu0 }
 0x17a   :  { %v438_v24 = vpop.f32.mrb[58].mxu0 }
 0x17b   :  { %v467_v25 = vpack.c.bf16 %v438_v24, %v434_v58  ;;  %v1834_v27 = vpop.f32.mrb[59].mxu0  ;;  %v706_v58 = vld [vmem:[%s2030_s3 + $0xe0] sm:$0xff]  ;;  %v708_v24 = vld [vmem:[%s2030_s3 + $0xf0] sm:$0xff] }
 0x17c   :  { %842 = vperm.xlu0 %1493, %v704_v15  }
 0x17d   :  { %1386 = vmatprep.subr.bf16.mxu1 %v467_v25  ;;  %v491_v25 = vunpack.c.h.s8.bf16 %v471_v11  ;;  %v508_v11 = vunpack.c.h.s8.bf16 %v480_v8 }
 0x17e   :  { %1387 = vmatpush3.bf16.msra.mxu1 %v459_v4  ;;  %v697_v4 = vld [vmem:[%s2030_s3 + $0x98] sm:$0xff] }
 0x17f   :  { %807 = vperm.xlu1 %1494, %v697_v4  }
 0x180   :  { %v444_v63 = vpop.f32.mrb[60].mxu0  ;;  %852 = vperm.xlu0 %1493, %v706_v58  }
 0x181   :  { %v1845_v29 = vpop.f32.mrb[61].mxu0 }
 0x182   :  { %v448_v32 = vpop.f32.mrb[62].mxu0 }
 0x183   :  { %v468_v1 = vpack.c.bf16 %v448_v32, %v444_v63  ;;  %v1856_v3 = vpop.f32.mrb[63].mxu0  ;;  %817 = vperm.xlu1 %1494, %v699_v43   ;;  %v493_v63 = vunpack.c.l.s8.bf16 %v473_v62  ;;  %v495_v32 = vunpack.c.h.s8.bf16 %v473_v62  ;;  %v516_v62 = vunpack.c.h.s8.bf16 %v484_v21 }
 0x184   :  { %862 = vperm.xlu0 %1493, %v708_v24   ;;  %v514_v24 = vunpack.c.l.s8.bf16 %v484_v21 }
 0x185   :  { %1388 = vmatprep.subr.bf16.mxu1 %v468_v1  ;;  %v475_v1 = vld [vmem:[%s2027_s0 + $0x30] sm:$0xff] }
 0x186   :  { %1389 = vmatpush3.bf16.msra.mxu1 %v460_v9  ;;  %v487_v9 = vunpack.c.h.s8.bf16 %v469_v35  ;;  %v498_v35 = vunpack.c.l.s8.bf16 %v476_v31  ;;  %v497_v4 = vunpack.c.l.s8.bf16 %v475_v1 }
 0x187   :  { %827 = vperm.xlu1 %1494, %v701_v33  }
 0x189   :  { %550 = vmatmul.mubr.bf16.vlgmr.msra.gmra.mrb[0].mxu1 %v485_v40  ;;  %v478_v40 = vld [vmem:[%s2027_s0 + $0x48] sm:$0xff] }
 0x18a   :  { %557 = vmatprep.mubr.bf16.mxu1 %v488_v42  ;;  %v499_v42 = vunpack.c.h.s8.bf16 %v475_v1  ;;  %v502_v43 = vunpack.c.l.s8.bf16 %v478_v40  ;;  %v504_v33 = vunpack.c.h.s8.bf16 %v478_v40 }
 0x18b   :  { %837 = vperm.xlu1 %1494, %v703_v50   ;;  %v479_v50 = vld [vmem:[%s2027_s0 + $0x50] sm:$0xff] }
 0x18c   :  { %v505_v52 = vunpack.c.l.s8.bf16 %v479_v50  ;;  %v507_v15 = vunpack.c.h.s8.bf16 %v479_v50 }
 0x18f   :  { %847 = vperm.xlu1 %1494, %v705_v13   ;;  %v482_v13 = vld [vmem:[%s2027_s0 + $0x68] sm:$0xff] }
 0x190   :  { %v512_v58 = vunpack.c.h.s8.bf16 %v482_v13 }
 0x191   :  { %558 = vmatmul.mubr.bf16.gmra.mrb[4].mxu1 %v487_v9  ;;  %v503_v9 = vunpack.c.h.s8.bf16 %v477_v45 }
 0x192   :  { %565 = vmatprep.mubr.bf16.mxu1 %v490_v48  ;;  %v506_v48 = vunpack.c.l.s8.bf16 %v480_v8 }
 0x193   :  { %857 = vperm.xlu1 %1494, %v707_v57  }
 0x197   :  { %867 = vperm.xlu1 %1494, %v709_v23  }
 0x199   :  { %566 = vmatmul.mubr.bf16.gmra.mrb[8].mxu1 %v489_v16  ;;  %v510_v16 = vunpack.c.l.s8.bf16 %v482_v13 }
 0x19a   :  { %573 = vmatprep.mubr.bf16.mxu1 %v492_v55  ;;  %v481_v55 = vld [vmem:[%s2027_s0 + $0x60] sm:$0xff] }
 0x19b   :  { %v509_v57 = vunpack.c.l.s8.bf16 %v481_v55  ;;  %v511_v23 = vunpack.c.h.s8.bf16 %v481_v55 }
 0x1a1   :  { %574 = vmatmul.mubr.bf16.gmra.mrb[12].mxu1 %v491_v25  ;;  %v483_v25 = vld [vmem:[%s2027_s0 + $0x70] sm:$0xff]  ;;  %s1587_s0 = smov [#allocation5]  }
 0x1a2   :  { %581 = vmatprep.mubr.bf16.mxu1 %v494_v60  ;;  %v513_v60 = vunpack.c.l.s8.bf16 %v483_v25 }
 0x1a9   :  { %582 = vmatmul.mubr.bf16.gmra.mrb[16].mxu1 %v493_v63  ;;  %v515_v63 = vunpack.c.h.s8.bf16 %v483_v25 }
 0x1aa   :  { %589 = vmatprep.mubr.bf16.mxu1 %v496_v30  ;;  %v713_v30 = vpop.permute.xlu0 %712 }
 0x1b1   :  { %590 = vmatmul.mubr.bf16.gmra.mrb[20].mxu1 %v495_v32 }
 0x1b2   :  { %597 = vmatprep.mubr.bf16.mxu1 %v498_v35 }
 0x1b9   :  { %598 = vmatmul.mubr.bf16.gmra.mrb[24].mxu1 %v497_v4 }
 0x1ba   :  { %605 = vmatprep.mubr.bf16.mxu1 %v500_v37  ;;  %v718_v37 = vpop.permute.xlu0 %717 }
 0x1c1   :  { %606 = vmatmul.mubr.bf16.gmra.mrb[28].mxu1 %v499_v42 }
 0x1c2   :  { %613 = vmatprep.mubr.bf16.mxu1 %v502_v43  ;;  %v1949_v43 = vld [vmem:[%s2031_s4] ss:$0 sm:$0xff]  ;;  %s1170_s4 = sshll.u32 %s1587_s0, 4  ;;  %s1171_s4 = int_to_ptr.vmem [resolvable:$true] %s1170_s4 }
 0x1c3   :  { %s1557_s27 = scalar_lea.vmem %s1171_s4, 2048  ;;  %p1562_p9 = scmp.lt.s32.totalorder %s1171_s4, %s1171_s4 }
 0x1c4   :  { %p1558_p8 = scmp.ne.s32.totalorder %s1171_s4, %s1557_s27  ;;  %p1563_p10 = scmp.lt.s32.totalorder %s1557_s27, %s1557_s27 }
 0x1c6   :  { %p1564_p11 = por %p1563_p10, %p1562_p9 }
 0x1c8   :  { %p1565_p12 = pnand %p1564_p11, %p1558_p8 }
 0x1c9   :  { %614 = vmatmul.mubr.bf16.gmra.mrb[32].mxu1 %v501_v6 }
 0x1ca   :  { %621 = vmatprep.mubr.bf16.mxu1 %v504_v33  ;;  %v723_v33 = vpop.permute.xlu1 %722 }
 0x1ce   :  { %v728_v21 = vpop.permute.xlu1 %727 }
 0x1d1   :  { %622 = vmatmul.mubr.bf16.gmra.mrb[36].mxu1 %v503_v9 }
 0x1d2   :  { %629 = vmatprep.mubr.bf16.mxu1 %v506_v48 }
 0x1d9   :  { %630 = vmatmul.mubr.bf16.gmra.mrb[40].mxu1 %v505_v52 }
 0x1da   :  { %637 = vmatprep.mubr.bf16.mxu1 %v508_v11 }
 0x1e1   :  { %638 = vmatmul.mubr.bf16.gmra.mrb[44].mxu1 %v507_v15 }
 0x1e2   :  { %645 = vmatprep.mubr.bf16.mxu1 %v510_v16 }
 0x1e9   :  { %646 = vmatmul.mubr.bf16.gmra.mrb[48].mxu1 %v509_v57 }
 0x1ea   :  { %653 = vmatprep.mubr.bf16.mxu1 %v512_v58 }
 0x1f1   :  { %654 = vmatmul.mubr.bf16.gmra.mrb[52].mxu1 %v511_v23 }
 0x1f2   :  { %661 = vmatprep.mubr.bf16.mxu1 %v514_v24 }
 0x1f9   :  { %662 = vmatmul.mubr.bf16.gmra.mrb[56].mxu1 %v513_v60 }
 0x1fa   :  { %669 = vmatprep.mubr.bf16.mxu1 %v516_v62 }
 0x201   :  { %670 = vmatmul.mubr.bf16.gmra.mrb[60].mxu1 %v515_v63 }
 0x25c   :  { %v1390_v31 = vpop.f32.mrb[0].mxu1 }
 0x25d   :  { %v1391_v32 = vpop.f32.mrb[1].mxu1 }
 0x25e   :  { %v1392_v35 = vadd.f32 %v1391_v32, %v1390_v31  ;;  %v1393_v1 = vpop.f32.mrb[2].mxu1  ;;  %v733_v32 = vpop.permute.xlu0 %732 }
 0x25f   :  { %v1394_v4 = vpop.f32.mrb[3].mxu1 }
 0x260   :  { %v870_v40 = vmul.f32 %v1392_v35, %v713_v30  ;;  %v1395_v42 = vadd.f32 %v1394_v4, %v1393_v1 }
 0x262   :  { %v902_v45 = vadd.f32 %v870_v40, %v1704_v36  ;;  %v871_v6 = vmul.f32 %v1395_v42, %v718_v37  ;;  %v738_v42 = vpop.permute.xlu1 %737 }
 0x264   :  { %v941_v8 = vadd.f32 %v1949_v43, %v902_v45  ;;  %v903_v9 = vadd.f32 %v871_v6, %v1706_v39  ;;  %v1396_v48 = vpop.f32.mrb[4].mxu1 }
 0x265   :  { %v1397_v50 = vpop.f32.mrb[5].mxu1 }
 0x266   :  { %v942_v52 = vadd.f32 %v1949_v43, %v903_v9  ;;  %v1398_v11 = vadd.f32 %v1397_v50, %v1396_v48  ;;  %v1399_v13 = vpop.f32.mrb[6].mxu1  ;;  %v973_v16 = vmax.f32 %v941_v8, 0.0 }
 0x267   :  { %v1400_v15 = vpop.f32.mrb[7].mxu1 }
 0x268   :  { %v974_v55 = vmax.f32 %v942_v52, 0.0  ;;  %v872_v57 = vmul.f32 %v1398_v11, %v723_v33  ;;  %v1401_v58 = vadd.f32 %v1400_v15, %v1399_v13  ;;  %v743_v11 = vpop.permute.xlu0 %742 }
 0x26a   :  { %v1282_v23 = vpack.c.bf16 %v974_v55, %v973_v16  ;;  %v904_v36 = vadd.f32 %v872_v57, %v1708_v41  ;;  %v873_v24 = vmul.f32 %v1401_v58, %v728_v21  ;;  %v748_v58 = vpop.permute.xlu1 %747 }
 0x26c   :  { %1283 = vst [vmem:[#allocation5] sm:$0xff] %v1282_v23   ;;  %v943_v25 = vadd.f32 %v1949_v43, %v904_v36  ;;  %v905_v39 = vadd.f32 %v873_v24, %v1710_v44  ;;  %v1402_v60 = vpop.f32.mrb[8].mxu1 }
 0x26d   :  { %v1403_v62 = vpop.f32.mrb[9].mxu1 }
 0x26e   :  { %v944_v63 = vadd.f32 %v1949_v43, %v905_v39  ;;  %v1404_v30 = vadd.f32 %v1403_v62, %v1402_v60  ;;  %v1405_v31 = vpop.f32.mrb[10].mxu1  ;;  %v975_v1 = vmax.f32 %v943_v25, 0.0 }
 0x26f   :  { %v1406_v35 = vpop.f32.mrb[11].mxu1 }
 0x270   :  { %v976_v4 = vmax.f32 %v944_v63, 0.0  ;;  %v874_v37 = vmul.f32 %v1404_v30, %v733_v32  ;;  %v1407_v40 = vadd.f32 %v1406_v35, %v1405_v31  ;;  %v753_v63 = vpop.permute.xlu0 %752 }
 0x272   :  { %v1287_v41 = vpack.c.bf16 %v976_v4, %v975_v1  ;;  %v906_v45 = vadd.f32 %v874_v37, %v1712_v46  ;;  %v875_v6 = vmul.f32 %v1407_v40, %v738_v42  ;;  %v758_v4 = vpop.permute.xlu1 %757 }
 0x274   :  { %1359 = vst [vmem:[#allocation5 + $0x8] sm:$0xff] %v1287_v41   ;;  %v945_v44 = vadd.f32 %v1949_v43, %v906_v45  ;;  %v907_v33 = vadd.f32 %v875_v6, %v1714_v49  ;;  %v1408_v8 = vpop.f32.mrb[12].mxu1 }
 0x275   :  { %v1409_v9 = vpop.f32.mrb[13].mxu1 }
 0x276   :  { %v946_v48 = vadd.f32 %v1949_v43, %v907_v33  ;;  %v1410_v50 = vadd.f32 %v1409_v9, %v1408_v8  ;;  %v1411_v52 = vpop.f32.mrb[14].mxu1  ;;  %v977_v15 = vmax.f32 %v945_v44, 0.0  ;;  %v763_v8 = vpop.permute.xlu0 %762 }
 0x277   :  { %v1412_v13 = vpop.f32.mrb[15].mxu1 }
 0x278   :  { %v978_v16 = vmax.f32 %v946_v48, 0.0  ;;  %v876_v55 = vmul.f32 %v1410_v50, %v743_v11  ;;  %v1413_v57 = vadd.f32 %v1412_v13, %v1411_v52  ;;  %v768_v13 = vpop.permute.xlu1 %767 }
 0x27a   :  { %v1292_v46 = vpack.c.bf16 %v978_v16, %v977_v15  ;;  %v908_v21 = vadd.f32 %v876_v55, %v1716_v51  ;;  %v877_v23 = vmul.f32 %v1413_v57, %v748_v58 }
 0x27c   :  { %1360 = vst [vmem:[#allocation5 + $0x10] sm:$0xff] %v1292_v46   ;;  %v947_v49 = vadd.f32 %v1949_v43, %v908_v21  ;;  %v909_v36 = vadd.f32 %v877_v23, %v1718_v54  ;;  %v1414_v24 = vpop.f32.mrb[16].mxu1 }
 0x27d   :  { %v1415_v25 = vpop.f32.mrb[17].mxu1 }
 0x27e   :  { %v948_v39 = vadd.f32 %v1949_v43, %v909_v36  ;;  %v1416_v60 = vadd.f32 %v1415_v25, %v1414_v24  ;;  %v1417_v62 = vpop.f32.mrb[18].mxu1  ;;  %v979_v31 = vmax.f32 %v947_v49, 0.0  ;;  %v773_v49 = vpop.permute.xlu0 %772 }
 0x27f   :  { %v1418_v30 = vpop.f32.mrb[19].mxu1 }
 0x280   :  { %v980_v32 = vmax.f32 %v948_v39, 0.0  ;;  %v878_v35 = vmul.f32 %v1416_v60, %v753_v63  ;;  %v1419_v1 = vadd.f32 %v1418_v30, %v1417_v62  ;;  %v778_v62 = vpop.permute.xlu1 %777 }
 0x282   :  { %v1297_v51 = vpack.c.bf16 %v980_v32, %v979_v31  ;;  %v910_v37 = vadd.f32 %v878_v35, %v1722_v56  ;;  %v879_v40 = vmul.f32 %v1419_v1, %v758_v4 }
 0x284   :  { %1361 = vst [vmem:[#allocation5 + $0x18] sm:$0xff] %v1297_v51   ;;  %v949_v54 = vadd.f32 %v1949_v43, %v910_v37  ;;  %v911_v42 = vadd.f32 %v879_v40, %v1728_v59  ;;  %v1420_v41 = vpop.f32.mrb[20].mxu1  ;;  %v783_v37 = vpop.permute.xlu0 %782 }
 0x285   :  { %v1421_v45 = vpop.f32.mrb[21].mxu1 }
 0x286   :  { %v950_v6 = vadd.f32 %v1949_v43, %v911_v42  ;;  %v1422_v44 = vadd.f32 %v1421_v45, %v1420_v41  ;;  %v1423_v33 = vpop.f32.mrb[22].mxu1  ;;  %v981_v48 = vmax.f32 %v949_v54, 0.0 }
 0x287   :  { %v1424_v9 = vpop.f32.mrb[23].mxu1 }
 0x288   :  { %v982_v50 = vmax.f32 %v950_v6, 0.0  ;;  %v880_v52 = vmul.f32 %v1422_v44, %v763_v8  ;;  %v1425_v11 = vadd.f32 %v1424_v9, %v1423_v33  ;;  %v788_v6 = vpop.permute.xlu1 %787 }
 0x28a   :  { %v1302_v56 = vpack.c.bf16 %v982_v50, %v981_v48  ;;  %v912_v15 = vadd.f32 %v880_v52, %v1732_v61  ;;  %v881_v16 = vmul.f32 %v1425_v11, %v768_v13  ;;  %v793_v13 = vpop.permute.xlu0 %792 }
 0x28c   :  { %1362 = vst [vmem:[#allocation5 + $0x20] sm:$0xff] %v1302_v56   ;;  %v951_v59 = vadd.f32 %v1949_v43, %v912_v15  ;;  %v913_v55 = vadd.f32 %v881_v16, %v1738_v0  ;;  %v1426_v57 = vpop.f32.mrb[24].mxu1 }
 0x28d   :  { %v1427_v58 = vpop.f32.mrb[25].mxu1 }
 0x28e   :  { %v952_v46 = vadd.f32 %v1949_v43, %v913_v55  ;;  %v1428_v21 = vadd.f32 %v1427_v58, %v1426_v57  ;;  %v1429_v23 = vpop.f32.mrb[26].mxu1  ;;  %v983_v24 = vmax.f32 %v951_v59, 0.0  ;;  %v798_v57 = vpop.permute.xlu1 %797 }
 0x28f   :  { %v1430_v36 = vpop.f32.mrb[27].mxu1 }
 0x290   :  { %v984_v25 = vmax.f32 %v952_v46, 0.0  ;;  %v882_v39 = vmul.f32 %v1428_v21, %v773_v49  ;;  %v1431_v60 = vadd.f32 %v1430_v36, %v1429_v23 }
 0x292   :  { %v1307_v61 = vpack.c.bf16 %v984_v25, %v983_v24  ;;  %v914_v63 = vadd.f32 %v882_v39, %v1742_v2  ;;  %v883_v30 = vmul.f32 %v1431_v60, %v778_v62  ;;  %v803_v39 = vpop.permute.xlu0 %802 }
 0x294   :  { %1363 = vst [vmem:[#allocation5 + $0x28] sm:$0xff] %v1307_v61   ;;  %v953_v0 = vadd.f32 %v1949_v43, %v914_v63  ;;  %v915_v31 = vadd.f32 %v883_v30, %v1748_v5  ;;  %v1432_v32 = vpop.f32.mrb[28].mxu1 }
 0x295   :  { %v1433_v35 = vpop.f32.mrb[29].mxu1 }
 0x296   :  { %v954_v1 = vadd.f32 %v1949_v43, %v915_v31  ;;  %v1434_v4 = vadd.f32 %v1433_v35, %v1432_v32  ;;  %v1435_v51 = vpop.f32.mrb[30].mxu1  ;;  %v985_v54 = vmax.f32 %v953_v0, 0.0  ;;  %v808_v0 = vpop.permute.xlu1 %807 }
 0x297   :  { %v1436_v40 = vpop.f32.mrb[31].mxu1 }
 0x298   :  { %v986_v42 = vmax.f32 %v954_v1, 0.0  ;;  %v884_v41 = vmul.f32 %v1434_v4, %v783_v37  ;;  %v1437_v45 = vadd.f32 %v1436_v40, %v1435_v51 }
 0x29a   :  { %v1312_v2 = vpack.c.bf16 %v986_v42, %v985_v54  ;;  %v916_v44 = vadd.f32 %v884_v41, %v1752_v7  ;;  %v885_v33 = vmul.f32 %v1437_v45, %v788_v6  ;;  %v813_v54 = vpop.permute.xlu0 %812 }
 0x29c   :  { %1364 = vst [vmem:[#allocation5 + $0x30] sm:$0xff] %v1312_v2   ;;  %v955_v5 = vadd.f32 %v1949_v43, %v916_v44  ;;  %v917_v8 = vadd.f32 %v885_v33, %v1758_v10  ;;  %v1438_v9 = vpop.f32.mrb[32].mxu1  ;;  %v818_v44 = vpop.permute.xlu1 %817 }
 0x29d   :  { %v1439_v48 = vpop.f32.mrb[33].mxu1 }
 0x29e   :  { %v956_v50 = vadd.f32 %v1949_v43, %v917_v8  ;;  %v1440_v52 = vadd.f32 %v1439_v48, %v1438_v9  ;;  %v1441_v11 = vpop.f32.mrb[34].mxu1  ;;  %v987_v15 = vmax.f32 %v955_v5, 0.0 }
 0x29f   :  { %v1442_v56 = vpop.f32.mrb[35].mxu1 }
 0x2a0   :  { %v988_v16 = vmax.f32 %v956_v50, 0.0  ;;  %v886_v59 = vmul.f32 %v1440_v52, %v793_v13  ;;  %v1443_v55 = vadd.f32 %v1442_v56, %v1441_v11  ;;  %v823_v13 = vpop.permute.xlu0 %822 }
 0x2a2   :  { %v1317_v7 = vpack.c.bf16 %v988_v16, %v987_v15  ;;  %v918_v58 = vadd.f32 %v886_v59, %v1760_v12  ;;  %v887_v46 = vmul.f32 %v1443_v55, %v798_v57  ;;  %v828_v57 = vpop.permute.xlu1 %827 }
 0x2a4   :  { %1365 = vst [vmem:[#allocation5 + $0x38] sm:$0xff] %v1317_v7   ;;  %v957_v10 = vadd.f32 %v1949_v43, %v918_v58  ;;  %v919_v21 = vadd.f32 %v887_v46, %v1762_v14  ;;  %v1444_v23 = vpop.f32.mrb[36].mxu1 }
 0x2a5   :  { %v1445_v49 = vpop.f32.mrb[37].mxu1 }
 0x2a6   :  { %v958_v36 = vadd.f32 %v1949_v43, %v919_v21  ;;  %v1446_v24 = vadd.f32 %v1445_v49, %v1444_v23  ;;  %v1447_v25 = vpop.f32.mrb[38].mxu1  ;;  %v989_v62 = vmax.f32 %v957_v10, 0.0 }
 0x2a7   :  { %v1448_v60 = vpop.f32.mrb[39].mxu1 }
 0x2a8   :  { %v990_v61 = vmax.f32 %v958_v36, 0.0  ;;  %v888_v63 = vmul.f32 %v1446_v24, %v803_v39  ;;  %v1449_v30 = vadd.f32 %v1448_v60, %v1447_v25  ;;  %v833_v24 = vpop.permute.xlu0 %832 }
 0x2aa   :  { %v1322_v12 = vpack.c.bf16 %v990_v61, %v989_v62  ;;  %v920_v31 = vadd.f32 %v888_v63, %v1764_v17  ;;  %v889_v32 = vmul.f32 %v1449_v30, %v808_v0  ;;  %v838_v63 = vpop.permute.xlu1 %837 }
 0x2ac   :  { %1366 = vst [vmem:[#allocation5 + $0x40] sm:$0xff] %v1322_v12   ;;  %v959_v14 = vadd.f32 %v1949_v43, %v920_v31  ;;  %v921_v35 = vadd.f32 %v889_v32, %v1766_v20  ;;  %v1450_v1 = vpop.f32.mrb[40].mxu1 }
 0x2ad   :  { %v1451_v4 = vpop.f32.mrb[41].mxu1 }
 0x2ae   :  { %v960_v51 = vadd.f32 %v1949_v43, %v921_v35  ;;  %v1452_v37 = vadd.f32 %v1451_v4, %v1450_v1  ;;  %v1453_v40 = vpop.f32.mrb[42].mxu1  ;;  %v991_v41 = vmax.f32 %v959_v14, 0.0  ;;  %v843_v4 = vpop.permute.xlu0 %842 }
 0x2af   :  { %v1454_v42 = vpop.f32.mrb[43].mxu1 }
 0x2b0   :  { %v992_v45 = vmax.f32 %v960_v51, 0.0  ;;  %v890_v6 = vmul.f32 %v1452_v37, %v813_v54  ;;  %v1455_v2 = vadd.f32 %v1454_v42, %v1453_v40 }
 0x2b2   :  { %v1327_v17 = vpack.c.bf16 %v992_v45, %v991_v41  ;;  %v922_v33 = vadd.f32 %v890_v6, %v1768_v22  ;;  %v891_v5 = vmul.f32 %v1455_v2, %v818_v44  ;;  %v848_v41 = vpop.permute.xlu1 %847 }
 0x2b4   :  { %1367 = vst [vmem:[#allocation5 + $0x48] sm:$0xff] %v1327_v17   ;;  %v961_v20 = vadd.f32 %v1949_v43, %v922_v33  ;;  %v923_v8 = vadd.f32 %v891_v5, %v1773_v26  ;;  %v1456_v9 = vpop.f32.mrb[44].mxu1 }
 0x2b5   :  { %v1457_v48 = vpop.f32.mrb[45].mxu1 }
 0x2b6   :  { %v962_v50 = vadd.f32 %v1949_v43, %v923_v8  ;;  %v1458_v52 = vadd.f32 %v1457_v48, %v1456_v9  ;;  %v1459_v11 = vpop.f32.mrb[46].mxu1  ;;  %v993_v15 = vmax.f32 %v961_v20, 0.0  ;;  %v853_v8 = vpop.permute.xlu0 %852 }
 0x2b7   :  { %v1460_v56 = vpop.f32.mrb[47].mxu1 }
 0x2b8   :  { %v994_v16 = vmax.f32 %v962_v50, 0.0  ;;  %v892_v59 = vmul.f32 %v1458_v52, %v823_v13  ;;  %v1461_v55 = vadd.f32 %v1460_v56, %v1459_v11  ;;  %v858_v13 = vpop.permute.xlu1 %857 }
 0x2ba   :  { %v1332_v22 = vpack.c.bf16 %v994_v16, %v993_v15  ;;  %v924_v7 = vadd.f32 %v892_v59, %v1775_v28  ;;  %v893_v58 = vmul.f32 %v1461_v55, %v828_v57 }
 0x2bc   :  { %1368 = vst [vmem:[#allocation5 + $0x50] sm:$0xff] %v1332_v22   ;;  %v963_v26 = vadd.f32 %v1949_v43, %v924_v7  ;;  %v925_v46 = vadd.f32 %v893_v58, %v1783_v34  ;;  %v1462_v10 = vpop.f32.mrb[48].mxu1  ;;  %v863_v58 = vpop.permute.xlu0 %862 }
 0x2bd   :  { %v1463_v21 = vpop.f32.mrb[49].mxu1 }
 0x2be   :  { %v964_v23 = vadd.f32 %v1949_v43, %v925_v46  ;;  %v1464_v49 = vadd.f32 %v1463_v21, %v1462_v10  ;;  %v1465_v36 = vpop.f32.mrb[50].mxu1  ;;  %v995_v39 = vmax.f32 %v963_v26, 0.0 }
 0x2bf   :  { %v1466_v25 = vpop.f32.mrb[51].mxu1 }
 0x2c0   :  { %v996_v60 = vmax.f32 %v964_v23, 0.0  ;;  %v894_v62 = vmul.f32 %v1464_v49, %v833_v24  ;;  %v1467_v61 = vadd.f32 %v1466_v25, %v1465_v36  ;;  %v868_v49 = vpop.permute.xlu1 %867 }
 0x2c2   :  { %v1337_v28 = vpack.c.bf16 %v996_v60, %v995_v39  ;;  %v926_v30 = vadd.f32 %v894_v62, %v1788_v38  ;;  %v895_v0 = vmul.f32 %v1467_v61, %v838_v63 }
 0x2c4   :  { %1369 = vst [vmem:[#allocation5 + $0x58] sm:$0xff] %v1337_v28   ;;  %v965_v34 = vadd.f32 %v1949_v43, %v926_v30  ;;  %v927_v12 = vadd.f32 %v895_v0, %v1796_v47  ;;  %v1468_v31 = vpop.f32.mrb[52].mxu1 }
 0x2c5   :  { %v1469_v32 = vpop.f32.mrb[53].mxu1 }
 0x2c6   :  { %v966_v14 = vadd.f32 %v1949_v43, %v927_v12  ;;  %v1470_v35 = vadd.f32 %v1469_v32, %v1468_v31  ;;  %v1471_v1 = vpop.f32.mrb[54].mxu1  ;;  %v997_v37 = vmax.f32 %v965_v34, 0.0 }
 0x2c7   :  { %v1472_v51 = vpop.f32.mrb[55].mxu1 }
 0x2c8   :  { %v998_v40 = vmax.f32 %v966_v14, 0.0  ;;  %v896_v54 = vmul.f32 %v1470_v35, %v843_v4  ;;  %v1473_v42 = vadd.f32 %v1472_v51, %v1471_v1 }
 0x2ca   :  { %v1342_v38 = vpack.c.bf16 %v998_v40, %v997_v37  ;;  %v928_v45 = vadd.f32 %v896_v54, %v1807_v53  ;;  %v897_v6 = vmul.f32 %v1473_v42, %v848_v41 }
 0x2cc   :  { %1370 = vst [vmem:[#allocation5 + $0x60] sm:$0xff] %v1342_v38   ;;  %v967_v47 = vadd.f32 %v1949_v43, %v928_v45  ;;  %v929_v2 = vadd.f32 %v897_v6, %v1815_v18  ;;  %v1474_v44 = vpop.f32.mrb[56].mxu1 }
 0x2cd   :  { %v1475_v17 = vpop.f32.mrb[57].mxu1 }
 0x2ce   :  { %v968_v33 = vadd.f32 %v1949_v43, %v929_v2  ;;  %v1476_v5 = vadd.f32 %v1475_v17, %v1474_v44  ;;  %v1477_v20 = vpop.f32.mrb[58].mxu1  ;;  %v999_v48 = vmax.f32 %v967_v47, 0.0 }
 0x2cf   :  { %v1478_v9 = vpop.f32.mrb[59].mxu1 }
 0x2d0   :  { %v1000_v50 = vmax.f32 %v968_v33, 0.0  ;;  %v898_v52 = vmul.f32 %v1476_v5, %v853_v8  ;;  %v1479_v11 = vadd.f32 %v1478_v9, %v1477_v20 }
 0x2d2   :  { %v1347_v53 = vpack.c.bf16 %v1000_v50, %v999_v48  ;;  %v930_v56 = vadd.f32 %v898_v52, %v1826_v19  ;;  %v899_v15 = vmul.f32 %v1479_v11, %v858_v13 }
 0x2d4   :  { %1371 = vst [vmem:[#allocation5 + $0x68] sm:$0xff] %v1347_v53   ;;  %v969_v18 = vadd.f32 %v1949_v43, %v930_v56  ;;  %v931_v16 = vadd.f32 %v899_v15, %v1834_v27  ;;  %v1480_v59 = vpop.f32.mrb[60].mxu1 }
 0x2d5   :  { %v1481_v55 = vpop.f32.mrb[61].mxu1 }
 0x2d6   :  { %v970_v57 = vadd.f32 %v1949_v43, %v931_v16  ;;  %v1482_v22 = vadd.f32 %v1481_v55, %v1480_v59  ;;  %v1483_v7 = vpop.f32.mrb[62].mxu1  ;;  %v1001_v46 = vmax.f32 %v969_v18, 0.0 }
 0x2d7   :  { %v1484_v26 = vpop.f32.mrb[63].mxu1 }
 0x2d8   :  { %v1002_v10 = vmax.f32 %v970_v57, 0.0  ;;  %v900_v21 = vmul.f32 %v1482_v22, %v863_v58  ;;  %v1485_v23 = vadd.f32 %v1484_v26, %v1483_v7 }
 0x2da   :  { %v1352_v19 = vpack.c.bf16 %v1002_v10, %v1001_v46  ;;  %v932_v36 = vadd.f32 %v900_v21, %v1845_v29  ;;  %v901_v24 = vmul.f32 %v1485_v23, %v868_v49 }
 0x2dc   :  { %1372 = vst [vmem:[#allocation5 + $0x70] sm:$0xff] %v1352_v19   ;;  %v971_v27 = vadd.f32 %v1949_v43, %v932_v36  ;;  %v933_v25 = vadd.f32 %v901_v24, %v1856_v3 }
 0x2de   :  { %v972_v39 = vadd.f32 %v1949_v43, %v933_v25  ;;  %v1003_v60 = vmax.f32 %v971_v27, 0.0 }
 0x2e0   :  { %v1004_v62 = vmax.f32 %v972_v39, 0.0 }
 0x2e2   :  { %v1357_v61 = vpack.c.bf16 %v1004_v62, %v1003_v60 }
 0x2e4   :  { %1373 = vst [vmem:[#allocation5 + $0x78] sm:$0xff] %v1357_v61  }
 0x2e5   :  { %1568 = shalt.err (!%p1565_p12)
}
 0x2e6   :  { %s1569_s30 = scalar_lea.hbm %s2032_s5, 2048 }
 0x2e7   :  { %p1570_p13 = scmp.ne.s32.totalorder %s2032_s5, %s1569_s30  ;;  %p1573_p0 = scmp.lt.u32.totalorder %s1569_s30, %s2032_s5 }
 0x2e9   :  { %p1575_p1 = pnand %p1573_p0, %p1570_p13 }
 0x2eb   :  { %1578 = shalt.err (!%p1575_p1)
}
 0x2ec   :  { %s1588_s3 = smov 64   ;;  %s1589_s9 = smov 4  }
 0x2ed   :  { %1176 = dma.vmem_to_hbm [thread:$0]  %s1171_s4, 2048, %s2032_s5, [#allocation4], %s1588_s3, %s1588_s3, %s1589_s9  }
 0x2ee   :  { %1581 = dma.done.wait [#allocation4], 2048  }
 0x2ef   :  { %1582 = vsyncadd [#allocation4], 4294965248 }
 0x2f0   :  { %1180 = vsyncpa [#allocation3], 1 }
 0x2f1   :  { %1181 = vsyncpa [#allocation4], 1 }

</bundles_post_ra>
